<compile_context>
chip_gen: v7x
topology: tpu7x:2x2x1
jax: 0.10.0
libtpu: 0.0.40
codegen_flags: <defaults>
</compile_context>

<pallas_src>
import functools

import jax
import jax.numpy as jnp
from jax.experimental import pallas as pl
from jax.experimental.pallas import tpu as pltpu


def _round_up(x, m):
    return ((x + m - 1) // m) * m


def _cdiv(a, b):
    return (a + b - 1) // b


def mlm_logits_lse_kernel(x_ref, w_ref, b_ref, logits_ref, lse_ref,
                          m_ref, l_ref, *, v_total):
    # x_ref: (TM, H)  w_ref: (H, TV)  b_ref: (1, TV) f32
    # logits_ref: (TM, TV) f32, streamed (unnormalized logits)
    # lse_ref: (TM, 1) f32, resident across the vocab axis
    # m_ref, l_ref: (TM, 1) f32 scratch -- running max / running sum(exp)
    j = pl.program_id(1)
    nv = pl.num_programs(1)
    tv = w_ref.shape[1]

    @pl.when(j == 0)
    def _init():
        m_ref[...] = jnp.full_like(m_ref, -jnp.inf)
        l_ref[...] = jnp.zeros_like(l_ref)

    # MXU matmul with f32 accumulation (x/w may be f32, bf16, or fp8 on v7x).
    logits = jnp.dot(x_ref[...], w_ref[...],
                     preferred_element_type=jnp.float32)
    logits = logits + b_ref[...].astype(jnp.float32)

    # Ragged last vocab tile: columns >= V read unspecified data from the
    # partial weight/bias block -- mask them out of max / sum-exp / store.
    col = j * tv + jax.lax.broadcasted_iota(jnp.int32, logits.shape, 1)
    logits = jnp.where(col < v_total, logits, -jnp.inf)

    # Stream unnormalized logits straight back to HBM (f32 staging keeps the
    # later lse subtraction exact even when the final output is bf16).
    logits_ref[...] = logits

    # Online logsumexp across vocab tiles.
    m_prev = m_ref[...]
    m_new = jnp.maximum(m_prev, jnp.max(logits, axis=-1, keepdims=True))
    l_ref[...] = l_ref[...] * jnp.exp(m_prev - m_new) + jnp.sum(
        jnp.exp(logits - m_new), axis=-1, keepdims=True)
    m_ref[...] = m_new

    @pl.when(j == nv - 1)
    def _finalize():
        lse_ref[...] = m_ref[...] + jnp.log(l_ref[...])


def mlm_normalize_kernel(logits_ref, lse_ref, o_ref):
    # Pure elementwise streaming pass: log_softmax = logits - lse.
    o_ref[...] = (logits_ref[...] - lse_ref[...]).astype(o_ref.dtype)


def masked_language_model(
    x,
    w,
    b,
    *,
    tm=512,                      # row tile: the weight-reuse lever; keep large
    tv=1024,                     # vocab tile (multiple of 128)
    out_dtype=jnp.float32,       # bf16 halves the (M, V) writeback if tolerable
    return_unnormalized=False,   # return (logits, lse) for a fused NLL consumer
    interpret=False,
):
    """Fused Linear(hidden -> vocab) + log_softmax(dim=-1).

    x: (B, S, H); w: (H, V) (nn.Linear weight, transposed); b: (V,).
    Pass x/w already in bf16 (fp8 on v7x) for the fast path; nothing is cast
    or padded here (a wrapper-side astype/pad of w costs a full extra HBM pass
    over the dominant traffic term). Accumulation / softmax math stay f32.
    """
    B, S, H = x.shape
    Hw, V = w.shape
    assert Hw == H and b.shape == (V,)
    M = B * S

    x2d = x.reshape(M, H)
    b2d = b.reshape(1, V).astype(jnp.float32)   # bias stays f32 (never fp8)

    # ---- tile selection --------------------------------------------------
    # dtype-correct sublane multiple: 8 (f32) / 16 (bf16) / 32 (fp8 / int8)
    sub = max(8, 32 // jnp.dtype(x.dtype).itemsize)
    tm_eff = min(_round_up(tm, sub), _round_up(M, sub))
    tv_eff = min(_round_up(tv, 128), _round_up(V, 128))
    # Keep >= 2 row tiles so the second TensorCore (v7x) is not idle on
    # small-M calls; large-M calls are unaffected by this cap.
    if M >= 2 * sub:
        tm_eff = min(tm_eff, _round_up(_cdiv(M, 2), sub))

    # ---- explicit VMEM budget: shrink tv first, never tm (reuse lever) ----
    xb = jnp.dtype(x.dtype).itemsize
    wb = jnp.dtype(w.dtype).itemsize

    def footprint(tm_, tv_):
        return (2 * tm_ * H * xb          # x row tile (double-buffered)
                + 2 * H * tv_ * wb        # streamed weight tile
                + 2 * tv_ * 4             # bias tile
                + 2 * tm_ * tv_ * 4       # streamed f32 logits out tile
                + 2 * tm_ * 4             # lse out tile
                + 2 * 2 * tm_ * 4)        # m / l scratch

    try:
        vmem_cap = pltpu.get_tpu_info().vmem_capacity_bytes
    except Exception:
        vmem_cap = 64 * 1024 * 1024       # assume the smallest target (v7x)
    budget = (3 * vmem_cap) // 4          # headroom for compiler scratch

    while footprint(tm_eff, tv_eff) > budget and tv_eff > 128:
        tv_eff = max(128, tv_eff // 2)
    while footprint(tm_eff, tv_eff) > budget and tm_eff > sub:
        tm_eff = max(sub, _round_up(tm_eff // 2, sub))
    vmem_limit = int(min(budget,
                         max(footprint(tm_eff, tv_eff) + (4 << 20), 32 << 20)))

    grid = (_cdiv(M, tm_eff), _cdiv(V, tv_eff))

    # ---- pass 1: unnormalized logits + per-row logsumexp ------------------
    logits, lse = pl.pallas_call(
        functools.partial(mlm_logits_lse_kernel, v_total=V),
        out_shape=(
            jax.ShapeDtypeStruct((M, V), jnp.float32),   # unnormalized logits
            jax.ShapeDtypeStruct((M, 1), jnp.float32),   # per-row logsumexp
        ),
        grid_spec=pltpu.PrefetchScalarGridSpec(
            num_scalar_prefetch=0,
            grid=grid,
            in_specs=[
                # activation row tile: resident across the vocab axis
                pl.BlockSpec((tm_eff, H), lambda i, j: (i, 0)),
                # weight tile: streamed along the vocab axis (dominant traffic)
                # TODO(synk): consider pipeline_mode=pl.Buffered(3) here if the
                # weight DMA issue latency shows at tile boundaries.
                pl.BlockSpec((H, tv_eff), lambda i, j: (0, j)),
                # f32 bias tile for this vocab slice
                pl.BlockSpec((1, tv_eff), lambda i, j: (0, j)),
            ],
            out_specs=[
                pl.BlockSpec((tm_eff, tv_eff), lambda i, j: (i, j)),
                pl.BlockSpec((tm_eff, 1), lambda i, j: (i, 0)),
            ],
            scratch_shapes=[
                pltpu.VMEM((tm_eff, 1), jnp.float32),   # running max
                pltpu.VMEM((tm_eff, 1), jnp.float32),   # running sum(exp)
            ],
        ),
        compiler_params=pltpu.CompilerParams(
            dimension_semantics=("parallel", "arbitrary"),
            vmem_limit_bytes=vmem_limit,
        ),
        interpret=interpret,
    )(x2d, w, b2d)

    if return_unnormalized:
        # TODO(synk): fuse the downstream NLL gather (logits[target] - lse)
        # instead of materializing the full (M, V) log-prob tensor.
        return logits.reshape(B, S, V), lse.reshape(B, S)

    # ---- pass 2: tiny elementwise normalization (logits - lse) ------------
    tmn = min(256, _round_up(M, 8))
    tvn = min(1024, _round_up(V, 128))
    out2d = pl.pallas_call(
        mlm_normalize_kernel,
        out_shape=jax.ShapeDtypeStruct((M, V), out_dtype),
        grid_spec=pltpu.PrefetchScalarGridSpec(
            num_scalar_prefetch=0,
            grid=(_cdiv(M, tmn), _cdiv(V, tvn)),
            in_specs=[
                pl.BlockSpec((tmn, tvn), lambda i, j: (i, j)),
                pl.BlockSpec((tmn, 1), lambda i, j: (i, 0)),
            ],
            out_specs=pl.BlockSpec((tmn, tvn), lambda i, j: (i, j)),
        ),
        compiler_params=pltpu.CompilerParams(
            dimension_semantics=("parallel", "parallel"),
            vmem_limit_bytes=vmem_limit,
        ),
        interpret=interpret,
        # NOTE: when out_dtype == f32 this pass could alias the logits buffer
        # in place via input_output_aliases={0: 0}; left off for simplicity.
    )(logits, lse)

    return out2d.reshape(B, S, V)


if __name__ == "__main__":
    # Shapes consistent with the module: batch=2, seq=8, hidden=32, vocab=128.
    B, S, H, V = 2, 8, 32, 128
    key = jax.random.PRNGKey(0)
    kx, kw, kb = jax.random.split(key, 3)

    x = jax.random.normal(kx, (B, S, H), dtype=jnp.float32)
    # nn.Linear(hidden, vocab_size): weight (V, H), bias (V,). We pass weight^T.
    w = jax.random.normal(kw, (H, V), dtype=jnp.float32) / jnp.sqrt(H)
    b = jax.random.normal(kb, (V,), dtype=jnp.float32) * 0.01

    out = jax.block_until_ready(masked_language_model(x, w, b))
    ref = jax.nn.log_softmax(jnp.einsum("bsh,hv->bsv", x, w) + b, axis=-1)
    assert out.shape == (B, S, V)
    assert jnp.allclose(out, ref, atol=1e-4, rtol=1e-4)

    # Ragged case: M and V not multiples of the tiles and the vocab axis spans
    # multiple grid steps -> exercises the online logsumexp, the in-kernel
    # column mask (no weight padding), and partial row/vocab blocks.
    B2, S2, H2, V2 = 3, 5, 32, 200
    kx2, kw2, kb2 = jax.random.split(jax.random.PRNGKey(1), 3)
    x2 = jax.random.normal(kx2, (B2, S2, H2), dtype=jnp.float32)
    w2 = jax.random.normal(kw2, (H2, V2), dtype=jnp.float32) / jnp.sqrt(H2)
    b2 = jax.random.normal(kb2, (V2,), dtype=jnp.float32) * 0.01

    out2 = jax.block_until_ready(masked_language_model(x2, w2, b2, tv=128))
    ref2 = jax.nn.log_softmax(jnp.einsum("bsh,hv->bsv", x2, w2) + b2, axis=-1)
    assert out2.shape == (B2, S2, V2)
    assert jnp.allclose(out2, ref2, atol=1e-4, rtol=1e-4)

    print("KERNEL_OK")
</pallas_src>

<mosaic_0001>
module attributes {stable_mosaic.version = 11 : i64} {
  func.func @mlm_logits_lse_kernel(%arg0: i32, %arg1: i32, %arg2: memref<8x32xf32, #tpu.memory_space<vmem>>, %arg3: memref<32x128xf32, #tpu.memory_space<vmem>>, %arg4: memref<1x128xf32, #tpu.memory_space<vmem>>, %arg5: memref<8x128xf32, #tpu.memory_space<vmem>>, %arg6: memref<8x1xf32, #tpu.memory_space<vmem>>, %arg7: memref<8x1xf32, #tpu.memory_space<vmem>>, %arg8: memref<8x1xf32, #tpu.memory_space<vmem>>) attributes {dimension_semantics = [#tpu.dimension_semantics<parallel>, #tpu.dimension_semantics<arbitrary>], iteration_bounds = array<i64: 2, 1>, scalar_prefetch = 0 : i64, scratch_operands = 2 : i64, tpu.core_type = #tpu.core_type<tc>, window_params = [{transform_indices = @transform_0, window_bounds = array<i64: 8, 32>}, {transform_indices = @transform_1, window_bounds = array<i64: 32, 128>}, {transform_indices = @transform_2, window_bounds = array<i64: 1, 128>}, {transform_indices = @transform_3, window_bounds = array<i64: 8, 128>}, {transform_indices = @transform_4, window_bounds = array<i64: 8, 1>}]} {
    %c0_i32 = arith.constant 0 : i32
    %0 = arith.cmpi eq, %arg1, %c0_i32 : i32
    %1 = arith.extui %0 : i1 to i32
    %c0_i32_0 = arith.constant 0 : i32
    %2 = arith.cmpi ne, %1, %c0_i32_0 : i32
    scf.if %2 {
      %cst_22 = arith.constant 0xFF800000 : f32
      %37 = vector.broadcast %cst_22 : f32 to vector<8x1xf32>
      %c0_23 = arith.constant 0 : index
      %c0_24 = arith.constant 0 : index
      %38 = vector.load %arg7[%c0_23, %c0_24] : memref<8x1xf32, #tpu.memory_space<vmem>>, vector<8x1xf32>
      tpu.vector_store %arg7[%c0_23, %c0_24], %37 {strides = array<i32>} : memref<8x1xf32, #tpu.memory_space<vmem>>, vector<8x1xf32>,
      %cst_25 = arith.constant 0.000000e+00 : f32
      %39 = vector.broadcast %cst_25 : f32 to vector<8x1xf32>
      %c0_26 = arith.constant 0 : index
      %c0_27 = arith.constant 0 : index
      %40 = vector.load %arg8[%c0_26, %c0_27] : memref<8x1xf32, #tpu.memory_space<vmem>>, vector<8x1xf32>
      tpu.vector_store %arg8[%c0_26, %c0_27], %39 {strides = array<i32>} : memref<8x1xf32, #tpu.memory_space<vmem>>, vector<8x1xf32>,
    } else {
    }
    %c0 = arith.constant 0 : index
    %c0_1 = arith.constant 0 : index
    %3 = vector.load %arg2[%c0, %c0_1] : memref<8x32xf32, #tpu.memory_space<vmem>>, vector<8x32xf32>
    %c0_2 = arith.constant 0 : index
    %c0_3 = arith.constant 0 : index
    %4 = vector.load %arg3[%c0_2, %c0_3] : memref<32x128xf32, #tpu.memory_space<vmem>>, vector<32x128xf32>
    %cst = arith.constant dense<0.000000e+00> : vector<8x128xf32>
    %5 = tpu.matmul %3, %4, %cst {dimension_numbers = #tpu.dot_dimension_numbers<[1], [0], [0], [1], [0, 0, 1, 1], [], []>} : vector<8x32xf32>, vector<32x128xf32>, vector<8x128xf32> -> vector<8x128xf32>
    %c0_4 = arith.constant 0 : index
    %c0_5 = arith.constant 0 : index
    %6 = vector.load %arg4[%c0_4, %c0_5] : memref<1x128xf32, #tpu.memory_space<vmem>>, vector<1x128xf32>
    %7 = vector.broadcast %6 : vector<1x128xf32> to vector<8x128xf32>
    %8 = arith.addf %5, %7 : vector<8x128xf32>
    %c128_i32 = arith.constant 128 : i32
    %9 = arith.muli %arg1, %c128_i32 : i32
    %10 = tpu.iota {dimensions = array<i32: 1>} : vector<8x128xi32>
    %11 = vector.broadcast %9 : i32 to vector<8x128xi32>
    %12 = arith.addi %11, %10 : vector<8x128xi32>
    %c128_i32_6 = arith.constant 128 : i32
    %13 = vector.broadcast %c128_i32_6 : i32 to vector<8x128xi32>
    %14 = arith.cmpi slt, %12, %13 : vector<8x128xi32>
    %cst_7 = arith.constant 0xFF800000 : f32
    %15 = vector.broadcast %cst_7 : f32 to vector<8x128xf32>
    %16 = arith.select %14, %8, %15 : vector<8x128xi1>, vector<8x128xf32>
    %c0_8 = arith.constant 0 : index
    %c0_9 = arith.constant 0 : index
    %17 = vector.load %arg5[%c0_8, %c0_9] : memref<8x128xf32, #tpu.memory_space<vmem>>, vector<8x128xf32>
    tpu.vector_store %arg5[%c0_8, %c0_9], %16 {strides = array<i32>} : memref<8x128xf32, #tpu.memory_space<vmem>>, vector<8x128xf32>,
    %c0_10 = arith.constant 0 : index
    %c0_11 = arith.constant 0 : index
    %18 = vector.load %arg7[%c0_10, %c0_11] : memref<8x1xf32, #tpu.memory_space<vmem>>, vector<8x1xf32>
    %cst_12 = arith.constant dense<0xFF800000> : vector<8xf32>
    %19 = vector.multi_reduction <maximumf>, %16, %cst_12 [1] : vector<8x128xf32> to vector<8xf32>
    %20 = vector.shape_cast %19 : vector<8xf32> to vector<8x1xf32>
    %21 = arith.maximumf %18, %20 : vector<8x1xf32>
    %c0_13 = arith.constant 0 : index
    %c0_14 = arith.constant 0 : index
    %22 = vector.load %arg8[%c0_13, %c0_14] : memref<8x1xf32, #tpu.memory_space<vmem>>, vector<8x1xf32>
    %23 = arith.subf %18, %21 : vector<8x1xf32>
    %24 = math.exp %23 : vector<8x1xf32>
    %25 = arith.mulf %22, %24 : vector<8x1xf32>
    %26 = vector.broadcast %21 : vector<8x1xf32> to vector<8x128xf32>
    %27 = arith.subf %16, %26 : vector<8x128xf32>
    %28 = math.exp %27 : vector<8x128xf32>
    %cst_15 = arith.constant dense<0.000000e+00> : vector<8xf32>
    %29 = vector.multi_reduction <add>, %28, %cst_15 [1] : vector<8x128xf32> to vector<8xf32>
    %30 = vector.shape_cast %29 : vector<8xf32> to vector<8x1xf32>
    %31 = arith.addf %25, %30 : vector<8x1xf32>
    %c0_16 = arith.constant 0 : index
    %c0_17 = arith.constant 0 : index
    %32 = vector.load %arg8[%c0_16, %c0_17] : memref<8x1xf32, #tpu.memory_space<vmem>>, vector<8x1xf32>
    tpu.vector_store %arg8[%c0_16, %c0_17], %31 {strides = array<i32>} : memref<8x1xf32, #tpu.memory_space<vmem>>, vector<8x1xf32>,
    %c0_18 = arith.constant 0 : index
    %c0_19 = arith.constant 0 : index
    %33 = vector.load %arg7[%c0_18, %c0_19] : memref<8x1xf32, #tpu.memory_space<vmem>>, vector<8x1xf32>
    tpu.vector_store %arg7[%c0_18, %c0_19], %21 {strides = array<i32>} : memref<8x1xf32, #tpu.memory_space<vmem>>, vector<8x1xf32>,
    %c0_i32_20 = arith.constant 0 : i32
    %34 = arith.cmpi eq, %arg1, %c0_i32_20 : i32
    %35 = arith.extui %34 : i1 to i32
    %c0_i32_21 = arith.constant 0 : i32
    %36 = arith.cmpi ne, %35, %c0_i32_21 : i32
    scf.if %36 {
      %c0_22 = arith.constant 0 : index
      %c0_23 = arith.constant 0 : index
      %37 = vector.load %arg7[%c0_22, %c0_23] : memref<8x1xf32, #tpu.memory_space<vmem>>, vector<8x1xf32>
      %c0_24 = arith.constant 0 : index
      %c0_25 = arith.constant 0 : index
      %38 = vector.load %arg8[%c0_24, %c0_25] : memref<8x1xf32, #tpu.memory_space<vmem>>, vector<8x1xf32>
      %39 = math.log %38 : vector<8x1xf32>
      %40 = arith.addf %37, %39 : vector<8x1xf32>
      %c0_26 = arith.constant 0 : index
      %c0_27 = arith.constant 0 : index
      %41 = vector.load %arg6[%c0_26, %c0_27] : memref<8x1xf32, #tpu.memory_space<vmem>>, vector<8x1xf32>
      tpu.vector_store %arg6[%c0_26, %c0_27], %40 {strides = array<i32>} : memref<8x1xf32, #tpu.memory_space<vmem>>, vector<8x1xf32>,
    } else {
    }
    return
  }
  func.func @transform_0(%arg0: i32, %arg1: i32) -> (i32, i32) {
    %c0_i32 = arith.constant 0 : i32
    %c0_i32_0 = arith.constant 0 : i32
    return %arg0, %c0_i32 : i32, i32
  }
  func.func @transform_1(%arg0: i32, %arg1: i32) -> (i32, i32) {
    %c0_i32 = arith.constant 0 : i32
    %c0_i32_0 = arith.constant 0 : i32
    return %c0_i32, %arg1 : i32, i32
  }
  func.func @transform_2(%arg0: i32, %arg1: i32) -> (i32, i32) {
    %c0_i32 = arith.constant 0 : i32
    %c0_i32_0 = arith.constant 0 : i32
    return %c0_i32, %arg1 : i32, i32
  }
  func.func @transform_3(%arg0: i32, %arg1: i32) -> (i32, i32) {
    %c0_i32 = arith.constant 0 : i32
    return %arg0, %arg1 : i32, i32
  }
  func.func @transform_4(%arg0: i32, %arg1: i32) -> (i32, i32) {
    %c0_i32 = arith.constant 0 : i32
    %c0_i32_0 = arith.constant 0 : i32
    return %arg0, %c0_i32 : i32, i32
  }
}

</mosaic_0001>

<bundles_post_ra>
// kernel: tpu_custom_call.1
= control target key start
LH: loop header
LB: loop body
LE: loop exit
PB: predicated region body
PF: predicated region fallthrough
CT: control target
= control target key end

     0   :  { %10 = vsyncpa [#allocation5], 0  ;;  %s1090_s0 = inlined_call_operand.hbm [shape: f32[16,32], index: 0, kind: input, shape index: {}]   ;;  %s1091_s1 = inlined_call_operand.hbm [shape: f32[32,128], index: 1, kind: input, shape index: {}]   ;;  %s1092_s2 = inlined_call_operand.vmem [shape: f32[1,128], index: 2, kind: input, shape index: {}]   ;;  %s1093_s3 = inlined_call_operand.hbm [shape: f32[16,128], index: 3, kind: output, shape index: {0}]   ;;  %s1094_s4 = inlined_call_operand.vmem [shape: f32[16,1], index: 4, kind: output, shape index: {1}]  }
   0x1   :  { %12 = vsyncpa [#allocation5 + $0x1], 0 }
   0x2   :  { %13 = vsyncpa [#allocation8], 0 }
   0x3   :  { %14 = vsyncpa [#allocation6], 0 }
   0x4   :  { %16 = vsyncpa [#allocation6 + $0x1], 0  ;;  %s865_s15 = smov 0   ;;  %s867_s16 = smov 0  }
   0x5   :  { %s869_s17 = smov 0   ;;  %s871_s18 = smov 0  }
   0x6   :  { %s873_s19 = smov 0   ;;  %s875_s20 = smov 0  }
   0x7 LB: > { %s556_s21 = sadd.s32 4294967295, %s828_s20   ;;  %s557_s22 = sadd.s32 4294967294, %s828_s20   ;;  %s828_s20 = sphi %s875_s20, %s22_s20   ;;  %s824_s19 = sphi %s873_s19, %s1118_s19   ;;  %s820_s18 = sphi %s871_s18, %s1117_s18   ;;  %s816_s17 = sphi %s869_s17, %s1116_s17   ;;  %s812_s16 = sphi %s867_s16, %s1115_s16   ;;  %s808_s15 = sphi %s865_s15, %s1114_s15  }
   0x8   : > { %p54_p0 = scmp.ne.s32.totalorder %s812_s16, %s808_s15  ;;  %p899_p1 = scmp.eq.s32.totalorder %s556_s21, 0 }
   0x9   : > { %p903_p2 = scmp.eq.s32.totalorder %s556_s21, 1  ;;  %p138_p3 = scmp.eq.s32.totalorder %s557_s22, 1 }
   0xa   : > { %s1099_s23 = scalar_select %p899_p1, 1, 0 }
   0xb   : > { %s1100_s24 = scalar_select %p903_p2, 1, 0 }
   0xc   : > { %p909_p4 = por %p899_p1, %p54_p0  ;;  %p558_p5 = scmp.ge.s32.totalorder %s828_s20, 1 }
   0xd   : > { %p914_p6 = por %p138_p3, %p54_p0  ;;  %p171_p7 = scmp.lt.s32.totalorder %s828_s20, 3 }
   0xe   : > { %s1101_s25 = scalar_select %p909_p4, 1, 0 }
   0xf   : > { %s1102_s26 = scalar_select %p914_p6, 1, 0 }
  0x10   : > { %p919_p8 = pnand %p558_p5, %p171_p7  ;;  %s830_s28 = smov [#allocation7]  }
  0x11   : > { %s185_s29 = sshll.u32 %s830_s28, 4  ;;  %s34_s5 = sadd.s32 1, %s824_s19  ;;  %s186_s29 = int_to_ptr.vmem [resolvable:$true] %s185_s29 }
  0x12   : > { %s1103_s27 = scalar_select %p919_p8, 1, 0 }
  0x13   : > { %p605_p9 = pneg %p919_p8  ;;  %s684_s8 = scalar_lea.hbm %s1091_s1, 512 }
  0x14   : > { %p685_p12 = scmp.ne.s32.totalorder %s1091_s1, %s684_s8  ;;  %p691_p5 = scmp.lt.u32.totalorder %s684_s8, %s1091_s1 }
  0x15   : > { %p928_p11 = pnand %p605_p9, %p899_p1 }
  0x17   : > { %p686_p13 = pneg %p928_p11 }
  0x19   : > { %p687_p0 = pnand %p686_p13, %p685_p12 }
  0x1b   : > { %p688_p3 = pneg %p687_p0 }
  0x1d   : > { %p693_p7 = pnand %p691_p5, %p688_p3 }
  0x1f   : > { %696 = shalt.err (!%p693_p7)
}
  0x20   : > { %s697_s13 = scalar_lea.vmem %s186_s29, 512  ;;  %p705_p1 = scmp.lt.s32.totalorder %s186_s29, %s186_s29 }
  0x21   : > { %p698_p9 = scmp.ne.s32.totalorder %s186_s29, %s697_s13  ;;  %p706_p4 = scmp.lt.s32.totalorder %s697_s13, %s697_s13 }
  0x23   : > { %p700_p10 = pnand %p698_p9, %p686_p13  ;;  %p707_p8 = por %p706_p4, %p705_p1 }
  0x25   : > { %p701_p6 = pneg %p700_p10 }
  0x27   : > { %p708_p2 = pnand %p707_p8, %p701_p6 }
  0x29   : > { %711 = shalt.err (!%p708_p2)
}
  0x2a   : > { %s831_s14 = smov 128   ;;  %s832_s21 = smov 8  }
  0x2b   : > { %608 = dma.hbm_to_vmem [thread:$0]  (!%p928_p11), %s1091_s1, 512, %s186_s29, [#allocation8], %s831_s14, %s831_s14, %s832_s21  }
  0x2c   : > { %p36_p1 = scmp.ge.s32.totalorder %s34_s5, 2  ;;  %s41_s6 = sadd.s32 1, %s816_s17 }
  0x2d   : > { %p48_p2 = scmp.ne.s32.totalorder %s816_s17, %s812_s16  ;;  %p49_p4 = scmp.eq.s32.totalorder %s828_s20, 0 }
  0x2e   : > { %s1120_s5 = smov (%p36_p1, %s34_s5), 0  ;;  %p1106_p8 = scmp.ne.s32.totalorder %s1100_s24, 0 }
  0x2f   : > { %p955_p6 = por %p49_p4, %p48_p2  ;;  %s38_s30 = ssub.s32 %s824_s19, %s1120_s5 }
  0x30   : > { %p961_p10 = por %p1106_p8, %p48_p2  ;;  %p618_p12 = scmp.lt.s32.totalorder %s828_s20, 2 }
  0x31   : > { %p39_p11 = scmp.eq.s32.totalorder %s38_s30, 0  ;;  %s205_s29 = sand.u32 1, %s816_s17  }
  0x32   : > { %s562_s9 = sshll.u32 %s205_s29, 3  ;;  %s563_s11 = sshll.u32 %s824_s19, 7 }
  0x33   : > { %s970_s10 = scalar_select %p39_p11, %s816_s17, %s41_s6  }
  0x34   : > { %s976_s14 = scalar_lea.hbm %s1090_s0, %s563_s11  ;;  %s209_s24 = scalar_lea.vmem [#allocation4], %s562_s9 }
  0x35   : > { %s216_s21 = sshll.u32 %s209_s24, 4  ;;  %p982_p13 = pnand %p618_p12, %p955_p6  ;;  %s978_s21 = int_to_ptr.vmem [resolvable:$true] %s216_s21 }
  0x36   : > { %s206_s28 = scalar_lea.sflag [#allocation5], %s205_s29  ;;  %s712_s6 = scalar_lea.hbm %s976_s14, 128 }
  0x37   : > { %p713_p0 = scmp.ne.s32.totalorder %s976_s14, %s712_s6  ;;  %p714_p3 = pneg %p982_p13 }
  0x38   : > { %s717_s11 = scalar_lea.hbm %s1090_s0, 256  ;;  %p718_p9 = scmp.lt.u32.totalorder %s976_s14, %s1090_s0 }
  0x39   : > { %p715_p5 = pnand %p714_p3, %p713_p0  ;;  %p719_p1 = scmp.lt.u32.totalorder %s717_s11, %s712_s6 }
  0x3a   : > { %p721_p4 = scmp.lt.u32.totalorder %s712_s6, %s976_s14 }
  0x3b   : > { %p716_p7 = pneg %p715_p5  ;;  %p720_p2 = por %p719_p1, %p718_p9 }
  0x3d   : > { %p722_p6 = por %p721_p4, %p720_p2 }
  0x3f   : > { %p723_p8 = pnand %p722_p6, %p716_p7 }
  0x41   : > { %726 = shalt.err (!%p723_p8)
}
  0x42   : > { %s727_s29 = scalar_lea.vmem %s978_s21, 128  ;;  %s833_s13 = smov [#allocation4]  }
  0x43   : > { %p728_p12 = scmp.ne.s32.totalorder %s978_s21, %s727_s29  ;;  %s732_s24 = sshll.u32 %s833_s13, 4  ;;  %s733_s24 = int_to_ptr.vmem [resolvable:$false] %s732_s24 }
  0x44   : > { %s734_s30 = scalar_lea.vmem %s733_s24, 256  ;;  %p735_p5 = scmp.lt.s32.totalorder %s978_s21, %s733_s24 }
  0x45   : > { %p730_p11 = pnand %p728_p12, %p714_p3  ;;  %p736_p9 = scmp.lt.s32.totalorder %s734_s30, %s727_s29 }
  0x47   : > { %p731_p0 = pneg %p730_p11  ;;  %p737_p1 = por %p736_p9, %p735_p5 }
  0x49   : > { %p738_p2 = pnand %p737_p1, %p731_p0 }
  0x4b   : > { %741 = shalt.err (!%p738_p2)
}
  0x4c   : > { %612 = dma.hbm_to_vmem [thread:$0]  (!%p982_p13), %s976_s14, 128, %s978_s21, %s206_s28  }
  0x4d   : > { %p1109_p7 = scmp.ne.s32.totalorder %s1103_s27, 0 }
  0x4e   : > { %s1014_s6 = sand.u32 (!%p1109_p7), 1, %s812_s16   ;;  %p1110_p3 = scmp.ne.s32.totalorder (!%p1109_p7), %s1101_s25, 0 }
  0x4f   : > { %225 = sbr.rel (%p1109_p7) target bundleno = 770 (0x302), region = 32  ;;  %s565_s9 = sshll.u32 (!%p1109_p7), %s1014_s6, 3 }
  0x50   : > { %s228_s11 = scalar_lea.sflag (!%p1109_p7), [#allocation5], %s1014_s6  ;;  %s231_s7 = scalar_lea.vmem (!%p1109_p7), [#allocation4], %s565_s9 }
  0x56   : > { %795 = dma.done.wait (%p1110_p3), %s228_s11, 128  }
  0x57   : > { %797 = vsyncadd (%p1110_p3), %s228_s11, 4294967168  ;;  %p1111_p13 = scmp.ne.s32.totalorder %s1099_s23, 0 }
  0x59   : > { %799 = dma.done.wait (%p1111_p13), [#allocation8], 512  }
  0x5a   : > { %801 = vsyncadd (%p1111_p13), [#allocation8], 4294966784  ;;  %vm278_vm0 = vcmask 7168   ;;  %v834_v0 = vmov 0.0|0.0   ;;  %v835_v1 = vmov 0.0   ;;  %vm836_vm1 = vmmov 0  }
  0x5b   : > { %591 = vmatprep.subr.bf16.mxu0 %v834_v0  ;;  %280 = vst.msk [vmem:[#allocation3] sm:$0xff] %vm278_vm0, %v835_v1  ;;  %588 = vmatprep.mubr.msk.f32.mxu0 %vm836_vm1, %v835_v1  ;;  %v282_v2 = vld [vmem:[#allocation7] sm:$0xff]  ;;  %v283_v3 = vld [vmem:[#allocation7 + $0x8] sm:$0xff]  ;;  %v284_v4 = vld [vmem:[#allocation7 + $0x10] sm:$0xff]  ;;  %vm293_vm2 = vcmask 261120   ;;  %v837_v9 = vmov -inf  }
  0x5c   : > { %v592_v5 = vpack.c.bf16 %v283_v3, %v282_v2  ;;  %v285_v6 = vld [vmem:[#allocation7 + $0x18] sm:$0xff]  ;;  %279 = vst.msk [vmem:[#allocation2] sm:$0xff] %vm278_vm0, %v837_v9  ;;  %v569_v10 = vld [vmem:[%s1092_s2] ss:$0 sm:$0xff]  ;;  %s260_s27 = scalar_lea.vmem [#allocation9], %s565_s9  ;;  %v838_v14 = vmov 0  }
  0x5d   : > { %v595_v7 = vpack.c.bf16 %v285_v6, %v284_v4  ;;  %v281_v8 = vld [vmem:[%s231_s7] sm:$0xff]  ;;  %677 = vset.pattern.permute.xlu0 %v838_v14  ;;  %s572_s14 = sshll.u32 %s820_s18, 7  ;;  %s426_s21 = sshll.u32 %s260_s27, 4  ;;  %s427_s21 = int_to_ptr.vmem [resolvable:$true] %s426_s21 }
  0x5e   : > { %593 = vmatpush3.bf16.msra.mxu0 %v592_v5  ;;  %s1040_s12 = scalar_lea.hbm %s1093_s3, %s572_s14  ;;  %s408_s29 = scalar_lea.sflag [#allocation6], %s1014_s6 }
  0x5f   : > { %594 = vmatprep.subr.bf16.mxu0 %v834_v0  ;;  %s742_s13 = scalar_lea.vmem %s427_s21, 128  ;;  %s839_s24 = smov [#allocation9]  }
  0x60   : > { %p743_p4 = scmp.ne.s32.totalorder %s427_s21, %s742_s13  ;;  %s746_s30 = sshll.u32 %s839_s24, 4  ;;  %s747_s30 = int_to_ptr.vmem [resolvable:$false] %s746_s30 }
  0x61   : > { %s748_s9 = scalar_lea.vmem %s747_s30, 256  ;;  %p749_p12 = scmp.lt.s32.totalorder %s427_s21, %s747_s30 }
  0x62   : > { %596 = vmatpush3.bf16.msra.mxu0 %v595_v7  ;;  %p744_p6 = pnand %p743_p4, %p961_p10  ;;  %p750_p11 = scmp.lt.s32.totalorder %s748_s9, %s742_s13 }
  0x63   : > { %v375_v15 = vld [vmem:[#allocation2] sm:$0xff] }
  0x64   : > { %p745_p8 = pneg %p744_p6  ;;  %p751_p0 = por %p750_p11, %p749_p12 }
  0x65   : > { %589 = vmatmul.mubr.msk.f32.vlgmr.msra.gmra.mrb[0].mxu0 %vm293_vm2, %v281_v8 }
  0x66   : > { %p752_p5 = pnand %p751_p0, %p745_p8 }
 0x138   : > { %v363_v11 = vpop.f32.mrb[0].mxu0 }
 0x139   : > { %v364_v12 = vadd.f32 %v569_v10, %v363_v11  ;;  %v590_v13 = vpop.f32.mrb[1].mxu0 }
 0x13b   : > { %374 = vst [vmem:[%s260_s27] sm:$0xff] %v364_v12  ;;  %376 = vmax.xlane.f32.xlu0 %v364_v12 }
 0x1c8   : > { %v377_v16 = vpop.xlane.xlu0 %376 }
 0x1c9   : > { %v378_v17 = vmax.f32 %v375_v15, %v377_v16 }
 0x1cb   : > { %v380_v18 = vsub.f32 %v375_v15, %v378_v17  ;;  %397 = vst.msk [vmem:[#allocation2] sm:$0xff] %vm278_vm0, %v378_v17  ;;  %386 = vperm.xlu0 %677, %v378_v17  }
 0x24a   : > { %v387_v19 = vpop.permute.xlu0 %386 }
 0x24b   : > { %v389_v20 = vsub.f32 %v364_v12, %v387_v19 }
 0x24d   : > { %v390_v21 = vmul.f32 1.442695, %v389_v20 }
 0x24f   : > { %678 = vpow2.f32 %v390_v21 }
 0x259   : > { %v679_v22 = vpop.eup %678 }
 0x25a   : > { %392 = vadd.xlane.f32.xlu1 %v679_v22 }
 0x25b   : > { %755 = shalt.err (!%p752_p5)
}
 0x25c   : > { %s756_s6 = scalar_lea.hbm %s1040_s12, 128  ;;  %s760_s23 = scalar_lea.hbm %s1093_s3, 256 }
 0x25d   : > { %p757_p9 = scmp.ne.s32.totalorder %s1040_s12, %s756_s6  ;;  %p761_p7 = scmp.lt.u32.totalorder %s1040_s12, %s1093_s3 }
 0x25e   : > { %p762_p3 = scmp.lt.u32.totalorder %s760_s23, %s756_s6  ;;  %p764_p4 = scmp.lt.u32.totalorder %s756_s6, %s1040_s12 }
 0x25f   : > { %p758_p1 = pnand %p757_p9, %p961_p10 }
 0x260   : > { %p763_p13 = por %p762_p3, %p761_p7 }
 0x261   : > { %p759_p2 = pneg %p758_p1 }
 0x262   : > { %p765_p6 = por %p764_p4, %p763_p13 }
 0x264   : > { %p766_p8 = pnand %p765_p6, %p759_p2 }
 0x266   : > { %769 = shalt.err (!%p766_p8)
}
 0x267   : > { %603 = dma.vmem_to_hbm [thread:$0]  (%p961_p10), %s427_s21, 128, %s1040_s12, %s408_s29   ;;  %v381_v23 = vmul.f32 1.442695, %v380_v18  ;;  %v379_v25 = vld [vmem:[#allocation3] sm:$0xff]  ;;  %v401_v32 = vld [vmem:[#allocation2] sm:$0xff] }
 0x268   : > { %p270_p12 = scmp.lt.s32.totalorder %s820_s18, 1 }
 0x269   : > { %680 = vpow2.f32 %v381_v23 }
 0x26a   : > { %s1122_s18 = smov (!%p270_p12, %s820_s18), 1 }
 0x26b   : > { %s568_s14 = sshll.u32 %s1122_s18, 3 }
 0x26c   : > { %s273_s21 = scalar_lea.vmem %s1094_s4, %s568_s14 }
 0x273   : > { %v681_v24 = vpop.eup %680 }
 0x274   : > { %v383_v26 = vmul.f32 %v681_v24, %v379_v25 }
 0x2e7   : > { %v393_v27 = vpop.xlane.xlu1 %392 }
 0x2e8   : > { %v394_v28 = vadd.f32 %v393_v27, %v383_v26 }
 0x2ea   : > { %396 = vst.msk [vmem:[#allocation3] sm:$0xff] %vm278_vm0, %v394_v28 }
 0x2f1   : > { %v402_v29 = vld [vmem:[#allocation3] sm:$0xff] }
 0x2f2   : > { %682 = vlog2.f32 %v402_v29 }
 0x2fc   : > { %v683_v30 = vpop.eup %682 }
 0x2fd   : > { %v404_v31 = vmul.f32 0.6931472, %v683_v30 }
 0x2ff   : > { %v405_v33 = vadd.f32 %v404_v31, %v401_v32 }
 0x301   : > { %406 = vst.msk [vmem:[%s273_s21] sm:$0xff] %vm278_vm0, %v405_v33 }
 0x302 PF: > { %s441_s28 = sand.u32 1, %s808_s15   ;;  %p1112_p10 = scmp.ne.s32.totalorder %s1102_s26, 0 }
 0x303   : > { %p1113_p11 = scmp.ge.s32.totalorder %s828_s20, 2  ;;  %s442_s12 = scalar_lea.sflag [#allocation6], %s441_s28 }
 0x305   : > { %p614_p0 = pnand %p1113_p11, %p1112_p10 }
 0x307   : > { %803 = dma.done.wait (!%p614_p0), %s442_s12, 128  }
 0x308   : > { %805 = vsyncadd (!%p614_p0), %s442_s12, 4294967168  ;;  %s22_s20 = sadd.s32 1, %s828_s20   ;;  %s1114_s15 = smov %s812_s16 }
 0x309   : > { %p19_p5 = scmp.ge.s32.totalorder %s22_s20, 4   ;;  %s1115_s16 = smov %s816_s17 }
 0x30a   : > { %s1116_s17 = smov %s970_s10  ;;  %s1117_s18 = smov %s824_s19 }
 0x30b   : > { %s1118_s19 = smov %s1120_s5  ;;  %21 = sbr.rel (!%p19_p5) target bundleno = 7 (0x7), region = 105 }
 0x312   :  { %454 = vsyncpa [#allocation5], 1 }
 0x313   :  { %456 = vsyncpa [#allocation5 + $0x1], 1 }
 0x314   :  { %457 = vsyncpa [#allocation8], 1 }
 0x315   :  { %458 = vsyncpa [#allocation6], 1 }
 0x316   :  { %460 = vsyncpa [#allocation6 + $0x1], 1 }

</bundles_post_ra>
